<compile_context>
chip_gen: v5e
topology: v5e:2x2
jax: 0.10.0
libtpu: 0.0.40
codegen_flags: <defaults>
</compile_context>

<pallas_src>
import functools
import math

import jax
import jax.numpy as jnp
from jax.experimental import pallas as pl
from jax.experimental.pallas import tpu as pltpu


def _rmsnorm_kernel(x_ref, w_ref, o_ref, *, eps):
    # x_ref: (block_rows, dim) input dtype
    # w_ref: (1, dim) float32 weight (resident: constant block index)
    # o_ref: (block_rows, dim) output dtype
    x = x_ref[...].astype(jnp.float32)                        # x.float()
    ms = jnp.mean(x * x, axis=-1, keepdims=True)              # pow(2).mean(-1, keepdim=True)
    normed = x * jax.lax.rsqrt(ms + eps)                      # x * rsqrt(ms + eps)  (EUP rsqrt)
    normed = normed.astype(x_ref.dtype)                       # .type_as(x)
    o_ref[...] = (normed * w_ref[...]).astype(o_ref.dtype)    # output * weight


def _round_up(n, m):
    return ((n + m - 1) // m) * m


def rmsnorm(x, weight, eps=1e-6, *, block_rows=None, out_dtype=None,
            vmem_limit_bytes=None):
    """RMSNorm over the last axis of x, matching the PyTorch module semantics.

    x:         (..., dim), any float dtype
    weight:    (dim,) parameter (float32 in the PyTorch module)
    out_dtype: None -> strict PyTorch promote(x.dtype, weight.dtype) output.
               Pass e.g. jnp.bfloat16 to halve output HBM traffic if the
               consumer tolerates it.
    """
    orig_shape = x.shape
    dim = orig_shape[-1]
    assert weight.shape == (dim,), f"weight shape {weight.shape} != ({dim},)"
    rows = math.prod(orig_shape[:-1]) if len(orig_shape) > 1 else 1

    if out_dtype is None:
        out_dtype = jnp.promote_types(x.dtype, weight.dtype)

    x2d = x.reshape(rows, dim)
    w2d = weight.reshape(1, dim).astype(jnp.float32)

    in_bytes = jnp.dtype(x.dtype).itemsize
    out_bytes = jnp.dtype(out_dtype).itemsize
    # Sublane packing alignment: 8 rows for 4-byte dtypes, 16 for 2-byte, 32 for 1-byte.
    row_align = max(8, 32 // in_bytes)
    rows_aligned = _round_up(rows, row_align)

    if block_rows is None:
        # Size the row tile against a conservative scoped-VMEM budget so it is
        # safe on v7x (64 MiB/TC) as well as v5e/v6e (128 MiB).
        # Per-row VMEM: double-buffered input + double-buffered output
        # + ~3 f32 temporaries from the f32 upcast / x*x / normed values.
        budget_bytes = 40 * 1024 * 1024
        bytes_per_row = dim * (2 * in_bytes + 2 * out_bytes + 3 * 4)
        block_rows = max(row_align, budget_bytes // max(bytes_per_row, 1))
        block_rows = min(block_rows, 1024)          # diminishing returns past ~1K rows
    # Never make the tile larger than the (aligned) row count: small inputs
    # should not be padded up to a huge tile.
    block_rows = min(block_rows, rows_aligned)
    # Round to the sublane alignment.
    block_rows = max(row_align, (block_rows // row_align) * row_align)

    padded_rows = pl.cdiv(rows, block_rows) * block_rows
    if padded_rows != rows:
        # Zero padding is numerically safe: rsqrt(0 + eps) is finite, and the
        # padded rows are sliced away below.
        x2d = jnp.pad(x2d, ((0, padded_rows - rows), (0, 0)))

    grid = (padded_rows // block_rows,)

    if vmem_limit_bytes is None:
        # Explicit scoped-VMEM limit: above the 16/32 MiB defaults, below
        # v7x's 64 MiB physical VMEM (leave headroom).
        vmem_limit_bytes = 48 * 1024 * 1024

    out = pl.pallas_call(
        functools.partial(_rmsnorm_kernel, eps=eps),
        out_shape=jax.ShapeDtypeStruct((padded_rows, dim), out_dtype),
        grid_spec=pltpu.PrefetchScalarGridSpec(
            num_scalar_prefetch=0,
            grid=grid,
            in_specs=[
                pl.BlockSpec((block_rows, dim), lambda i: (i, 0)),
                pl.BlockSpec((1, dim), lambda i: (0, 0)),   # weight stays resident
            ],
            out_specs=pl.BlockSpec((block_rows, dim), lambda i: (i, 0)),
        ),
        compiler_params=pltpu.CompilerParams(
            # Row axis is embarrassingly parallel -> megacore sharding on v7x.
            dimension_semantics=("parallel",),
            vmem_limit_bytes=vmem_limit_bytes,
        ),
    )(x2d, w2d)

    if padded_rows != rows:
        out = out[:rows]
    return out.reshape(orig_shape[:-1] + (dim,))


def _rmsnorm_ref(x, weight, eps=1e-6):
    xf = x.astype(jnp.float32)
    normed = xf * jax.lax.rsqrt(jnp.mean(xf * xf, axis=-1, keepdims=True) + eps)
    normed = normed.astype(x.dtype)
    return normed * weight.astype(jnp.float32)


if __name__ == "__main__":
    key = jax.random.PRNGKey(0)
    batch, seq, hidden = 2, 8, 32

    # Input in bf16 (typical usage); weight is float32 ones per __init__.
    x = jax.random.normal(key, (batch, seq, hidden), dtype=jnp.float32).astype(jnp.bfloat16)
    weight = jnp.ones((hidden,), dtype=jnp.float32)

    out = rmsnorm(x, weight, eps=1e-6)
    out = jax.block_until_ready(out)

    ref = _rmsnorm_ref(x, weight, eps=1e-6)
    assert out.shape == (batch, seq, hidden)
    assert out.dtype == ref.dtype
    assert jnp.allclose(out, ref, atol=1e-2, rtol=1e-2), "mismatch vs reference"

    # Exercise the ragged-rows path (rows not a multiple of the tile) at a
    # slightly larger shape to make sure padding + slicing is correct.
    x2 = jax.random.normal(jax.random.PRNGKey(1), (3, 7, hidden), dtype=jnp.float32)
    out2 = jax.block_until_ready(rmsnorm(x2, weight, eps=1e-6, block_rows=8))
    ref2 = _rmsnorm_ref(x2, weight, eps=1e-6)
    assert jnp.allclose(out2, ref2, atol=1e-5, rtol=1e-5), "ragged-row mismatch"

    # Non-f32 weight path (dtype promotion stays consistent with PyTorch).
    w_bf16 = jnp.ones((hidden,), dtype=jnp.bfloat16)
    out3 = jax.block_until_ready(rmsnorm(x, w_bf16, eps=1e-6))
    assert out3.dtype == jnp.bfloat16

    print("KERNEL_OK")
</pallas_src>

<mosaic_0001>
module attributes {stable_mosaic.version = 11 : i64} {
  func.func @_rmsnorm_kernel(%arg0: i32, %arg1: memref<16x32xbf16, #tpu.memory_space<vmem>>, %arg2: memref<1x32xf32, #tpu.memory_space<vmem>>, %arg3: memref<16x32xf32, #tpu.memory_space<vmem>>) attributes {dimension_semantics = [#tpu.dimension_semantics<parallel>], iteration_bounds = array<i64: 1>, scalar_prefetch = 0 : i64, scratch_operands = 0 : i64, tpu.core_type = #tpu.core_type<tc>, window_params = [{transform_indices = @transform_0, window_bounds = array<i64: 16, 32>}, {pipeline_mode = #tpu.pipeline_mode<synchronous>, transform_indices = @transform_1, window_bounds = array<i64: 1, 32>}, {transform_indices = @transform_2, window_bounds = array<i64: 16, 32>}]} {
    %c0 = arith.constant 0 : index
    %c0_0 = arith.constant 0 : index
    %0 = vector.load %arg1[%c0, %c0_0] : memref<16x32xbf16, #tpu.memory_space<vmem>>, vector<16x32xbf16>
    %1 = arith.extf %0 : vector<16x32xbf16> to vector<16x32xf32>
    %2 = arith.mulf %1, %1 : vector<16x32xf32>
    %cst = arith.constant dense<0.000000e+00> : vector<16xf32>
    %3 = vector.multi_reduction <add>, %2, %cst [1] : vector<16x32xf32> to vector<16xf32>
    %4 = vector.shape_cast %3 : vector<16xf32> to vector<16x1xf32>
    %cst_1 = arith.constant 3.200000e+01 : f32
    %5 = vector.broadcast %cst_1 : f32 to vector<16x1xf32>
    %6 = arith.divf %4, %5 : vector<16x1xf32>
    %cst_2 = arith.constant 9.99999997E-7 : f32
    %7 = vector.broadcast %cst_2 : f32 to vector<16x1xf32>
    %8 = arith.addf %6, %7 : vector<16x1xf32>
    %9 = math.rsqrt %8 : vector<16x1xf32>
    %10 = vector.broadcast %9 : vector<16x1xf32> to vector<16x32xf32>
    %11 = arith.mulf %1, %10 : vector<16x32xf32>
    %12 = arith.truncf %11 : vector<16x32xf32> to vector<16x32xbf16>
    %c0_3 = arith.constant 0 : index
    %c0_4 = arith.constant 0 : index
    %13 = vector.load %arg2[%c0_3, %c0_4] : memref<1x32xf32, #tpu.memory_space<vmem>>, vector<1x32xf32>
    %14 = arith.extf %12 : vector<16x32xbf16> to vector<16x32xf32>
    %15 = vector.broadcast %13 : vector<1x32xf32> to vector<16x32xf32>
    %16 = arith.mulf %14, %15 : vector<16x32xf32>
    %c0_5 = arith.constant 0 : index
    %c0_6 = arith.constant 0 : index
    %17 = vector.load %arg3[%c0_5, %c0_6] : memref<16x32xf32, #tpu.memory_space<vmem>>, vector<16x32xf32>
    tpu.vector_store %arg3[%c0_5, %c0_6], %16 {strides = array<i32>} : memref<16x32xf32, #tpu.memory_space<vmem>>, vector<16x32xf32>,
    return
  }
  func.func @transform_0(%arg0: i32) -> (i32, i32) {
    %c0_i32 = arith.constant 0 : i32
    %c0_i32_0 = arith.constant 0 : i32
    return %arg0, %c0_i32 : i32, i32
  }
  func.func @transform_1(%arg0: i32) -> (i32, i32) {
    %c0_i32 = arith.constant 0 : i32
    %c0_i32_0 = arith.constant 0 : i32
    %c0_i32_1 = arith.constant 0 : i32
    return %c0_i32, %c0_i32_0 : i32, i32
  }
  func.func @transform_2(%arg0: i32) -> (i32, i32) {
    %c0_i32 = arith.constant 0 : i32
    %c0_i32_0 = arith.constant 0 : i32
    return %arg0, %c0_i32 : i32, i32
  }
}

</mosaic_0001>

<bundles_post_ra>
// kernel: tpu_custom_call.1
= control target key start
LH: loop header
LB: loop body
LE: loop exit
PB: predicated region body
PF: predicated region fallthrough
CT: control target
= control target key end

     0   :  { %7 = vsyncpa [#allocation3], 0  ;;  %s253_s0 = inlined_call_operand.hbm [shape: bf16[16,32], index: 0, kind: input, shape index: {}]   ;;  %s254_s1 = inlined_call_operand.hbm [shape: f32[1,32], index: 1, kind: input, shape index: {}]   ;;  %s255_s2 = inlined_call_operand.hbm [shape: f32[16,32], index: 2, kind: output, shape index: {}]  }
   0x1   :  { %8 = vsyncpa [#allocation6], 0 }
   0x2   :  { %9 = vsyncpa [#allocation4], 0  ;;  %s14_s11 = sshll.u32 %s253_s0, 4  ;;  %s217_s12 = smov [#allocation2]   ;;  %s15_s11 = int_to_ptr.hbm [resolvable:$true] %s14_s11 }
   0x3   :  { %s16_s13 = sshll.u32 %s217_s12, 4  ;;  %s28_s16 = sshll.u32 %s254_s1, 4  ;;  %s17_s13 = int_to_ptr.vmem [resolvable:$true] %s16_s13  ;;  %s29_s16 = int_to_ptr.hbm [resolvable:$true] %s28_s16 }
   0x4   :  { %s218_s17 = smov 64   ;;  %s219_s18 = smov 4  }
   0x5   :  { %22 = dma.hbm_to_vmem [thread:$0]  %s15_s11, 128, %s17_s13, [#allocation3], %s218_s17, %s218_s17, %s219_s18  }
   0x6   :  { %s220_s19 = smov [#allocation5]  }
   0x7   :  { %s30_s20 = sshll.u32 %s220_s19, 4  ;;  %s31_s20 = int_to_ptr.vmem [resolvable:$true] %s30_s20 }
   0x8   :  { %33 = dma.hbm_to_vmem [thread:$0]  %s29_s16, 16, %s31_s20, [#allocation6]  }
   0x9   :  { %211 = dma.done.wait [#allocation3], 128  }
   0xa   :  { %212 = vsyncadd [#allocation3], 4294967168 }
   0xb   :  { %213 = dma.done.wait [#allocation6], 16  }
   0xc   :  { %214 = vsyncadd [#allocation6], 4294967280  ;;  %v121_v0 = vld [vmem:[#allocation2] sm:$0xff]   ;;  %vm48_vm0 = vcmask 261120   ;;  %v221_v7 = vmov 32.0   ;;  %s222_s0 = smov [#allocation7]  }
   0xd   :  { %v122_v1 = vunpack.c.l.bf16 %v121_v0  ;;  %v123_v3 = vunpack.c.h.bf16 %v121_v0  ;;  %133 = vrcp.f32 %v221_v7  ;;  %v132_v32 = vld [vmem:[#allocation5] ss:$0 sm:$0xff]  ;;  %s104_s1 = sshll.u32 %s222_s0, 4  ;;  %s106_s23 = sshll.u32 %s255_s2, 4  ;;  %s105_s1 = int_to_ptr.vmem [resolvable:$true] %s104_s1  ;;  %s107_s23 = int_to_ptr.hbm [resolvable:$true] %s106_s23 }
   0xe   :  { %s223_s24 = smov 128   ;;  %s224_s25 = smov 8  }
   0xf   :  { %v46_v2 = vmul.f32 %v122_v1, %v122_v1  ;;  %v47_v5 = vmul.f32 %v123_v3, %v123_v3 }
  0x11   :  { %v49_v4 = vsel %vm48_vm0, %v46_v2, 0.0  ;;  %v52_v6 = vsel %vm48_vm0, %v47_v5, 0.0 }
  0x12   :  { %50 = vadd.xlane.f32.xlu0 %v49_v4 }
  0x13   :  { %v134_v8 = vpop.eup %133 }
  0x14   :  { %v56_v9 = vmul.f32 32.0, %v134_v8  ;;  %vm60_vm1 = vweird.f32 %v134_v8 }
  0x16   :  { %v57_v10 = vsub.f32 1.0, %v56_v9 }
  0x18   :  { %v58_v11 = vmul.f32 %v134_v8, %v57_v10 }
  0x1a   :  { %53 = vadd.xlane.f32.xlu0 %v52_v6  ;;  %v59_v12 = vadd.f32 %v134_v8, %v58_v11 }
  0x1c   :  { %v61_v13 = vsel %vm60_vm1, %v134_v8, %v59_v12 }
  0x85   :  { %v51_v14 = vpop.xlane.xlu0 %50 }
  0x86   :  { %v62_v15 = vmul.f32 %v61_v13, %v51_v14 }
  0x88   :  { %v64_v16 = vadd.f32 1e-06, %v62_v15 }
  0x8a   :  { %135 = vrsqrt.f32 %v64_v16  ;;  %vm72_vm3 = vweird.f32 %v64_v16 }
  0x8d   :  { %v54_v17 = vpop.xlane.xlu0 %53 }
  0x8e   :  { %v63_v18 = vmul.f32 %v61_v13, %v54_v17 }
  0x90   :  { %v136_v19 = vpop.eup %135  ;;  %v65_v20 = vadd.f32 1e-06, %v63_v18 }
  0x91   :  { %v67_v21 = vmul.f32 %v136_v19, %v64_v16  ;;  %vm73_vm2 = vweird.f32 %v136_v19 }
  0x92   :  { %137 = vrsqrt.f32 %v65_v20  ;;  %vm74_vm4 = vmor %vm72_vm3, %vm73_vm2  ;;  %vm82_vm6 = vweird.f32 %v65_v20 }
  0x93   :  { %v68_v22 = vmul.f32 %v136_v19, %v67_v21 }
  0x95   :  { %v69_v23 = vmul.f32 0.5, %v68_v22 }
  0x97   :  { %v70_v24 = vsub.f32 1.5, %v69_v23 }
  0x98   :  { %v138_v25 = vpop.eup %137 }
  0x99   :  { %v71_v26 = vmul.f32 %v136_v19, %v70_v24  ;;  %v77_v27 = vmul.f32 %v138_v25, %v65_v20  ;;  %vm83_vm5 = vweird.f32 %v138_v25 }
  0x9a   :  { %vm84_vm7 = vmor %vm82_vm6, %vm83_vm5 }
  0x9b   :  { %v75_v28 = vsel %vm74_vm4, %v136_v19, %v71_v26  ;;  %v78_v29 = vmul.f32 %v138_v25, %v77_v27 }
  0x9c   :  { %v86_v30 = vmul.f32 %v122_v1, %v75_v28 }
  0x9d   :  { %v79_v31 = vmul.f32 0.5, %v78_v29 }
  0x9e   :  { %v88_v33 = vpack.c.bf16 %v86_v30, %v86_v30 }
  0x9f   :  { %v80_v34 = vsub.f32 1.5, %v79_v31 }
  0xa0   :  { %v91_v35 = vunpack.c.l.bf16 %v88_v33 }
  0xa1   :  { %v81_v36 = vmul.f32 %v138_v25, %v80_v34 }
  0xa2   :  { %v96_v37 = vmul.f32 %v132_v32, %v91_v35 }
  0xa3   :  { %v85_v38 = vsel %vm84_vm7, %v138_v25, %v81_v36 }
  0xa4   :  { %98 = vst.msk [vmem:[#allocation7] sm:$0xff] %vm48_vm0, %v96_v37  ;;  %v87_v39 = vmul.f32 %v123_v3, %v85_v38 }
  0xa6   :  { %v89_v40 = vpack.c.bf16 %v87_v39, %v87_v39 }
  0xa8   :  { %v92_v41 = vunpack.c.l.bf16 %v89_v40 }
  0xaa   :  { %v97_v42 = vmul.f32 %v132_v32, %v92_v41 }
  0xac   :  { %99 = vst.msk [vmem:[#allocation7 + $0x8] sm:$0xff] %vm48_vm0, %v97_v42 }
  0xad   :  { %112 = dma.vmem_to_hbm [thread:$0]  %s105_s1, 256, %s107_s23, [#allocation4], %s223_s24, %s223_s24, %s224_s25  }
  0xae   :  { %215 = dma.done.wait [#allocation4], 256  }
  0xaf   :  { %216 = vsyncadd [#allocation4], 4294967040 }
  0xb0   :  { %117 = vsyncpa [#allocation3], 1 }
  0xb1   :  { %118 = vsyncpa [#allocation6], 1 }
  0xb2   :  { %119 = vsyncpa [#allocation4], 1 }

</bundles_post_ra>
